<compile_context>
chip_gen: v5e
topology: v5e:2x2
jax: 0.10.0
libtpu: 0.0.40
codegen_flags: <defaults>
</compile_context>

<pallas_src>
import functools
import math

import jax
import jax.numpy as jnp
from jax import lax
from jax.experimental import pallas as pl
from jax.experimental.pallas import tpu as pltpu

# ---- model config (small, deterministic) ----
VOCAB = 64
VOCAB_PAD = 128                  # lane-dense LM-head output width
SEQ = 8
HIDDEN = 32
HEADS = 2
HEAD_DIM = HIDDEN // HEADS
FFN = 4 * HIDDEN
LN_EPS = 1e-5
NEG_INF = -1e9


def _transformer_lm_kernel(x_ref, bias_ref,
                           wq_ref, wk_ref, wv_ref, wo_ref,
                           ln1g_ref, ln1b_ref,
                           w1_ref, w2_ref,
                           ln2g_ref, ln2b_ref,
                           wlm_ref,
                           logits_ref):
    """Single invocation over the whole (flattened) batch. Shapes:
       x: (B*S, D) f32, bias: (B*S, B*S) f32,
       wq/wk/wv: (H, D, hd) bf16, wo: (H, hd, D) bf16,
       w1: (D, FFN) bf16, w2: (FFN, D) bf16, wlm: (D, VOCAB_PAD) bf16,
       logits out: (B*S, VOCAB_PAD) f32."""
    x = x_ref[...]                                   # (BS, D) f32
    bias = bias_ref[...]                             # (BS, BS) f32 additive mask
    scale = 1.0 / math.sqrt(HEAD_DIM)

    xb = x.astype(jnp.bfloat16)

    # ---- self attention (static unroll over heads; leading-axis weight indexing only) ----
    attn_out = jnp.zeros_like(x)                     # (BS, D) f32
    for h in range(HEADS):
        q = jnp.dot(xb, wq_ref[h], preferred_element_type=jnp.float32)   # (BS, hd)
        k = jnp.dot(xb, wk_ref[h], preferred_element_type=jnp.float32)   # (BS, hd)
        v = jnp.dot(xb, wv_ref[h], preferred_element_type=jnp.float32)   # (BS, hd)

        # scores: contract head_dim directly (no explicit k.T)
        s = lax.dot_general(q.astype(jnp.bfloat16), k.astype(jnp.bfloat16),
                            (((1,), (1,)), ((), ())),
                            preferred_element_type=jnp.float32) * scale  # (BS, BS)
        s = s + bias
        s = s - jnp.max(s, axis=-1, keepdims=True)
        p = jnp.exp(s)
        p = p * pl.reciprocal(jnp.sum(p, axis=-1, keepdims=True), approx=True)

        o = jnp.dot(p.astype(jnp.bfloat16), v.astype(jnp.bfloat16),
                    preferred_element_type=jnp.float32)                  # (BS, hd)
        # sum of per-head projections == concat(heads) @ Wo
        attn_out = attn_out + jnp.dot(o.astype(jnp.bfloat16), wo_ref[h],
                                      preferred_element_type=jnp.float32)

    x = x + attn_out

    # ---- layernorm 1 (f32) ----
    mu = jnp.mean(x, axis=-1, keepdims=True)
    var = jnp.mean((x - mu) * (x - mu), axis=-1, keepdims=True)
    x = (x - mu) * lax.rsqrt(var + LN_EPS) * ln1g_ref[...] + ln1b_ref[...]

    # ---- MLP ----
    h1 = jnp.maximum(jnp.dot(x.astype(jnp.bfloat16), w1_ref[...],
                             preferred_element_type=jnp.float32), 0.0)   # (BS, FFN)
    x = x + jnp.dot(h1.astype(jnp.bfloat16), w2_ref[...],
                    preferred_element_type=jnp.float32)

    # ---- layernorm 2 (f32) ----
    mu = jnp.mean(x, axis=-1, keepdims=True)
    var = jnp.mean((x - mu) * (x - mu), axis=-1, keepdims=True)
    x = (x - mu) * lax.rsqrt(var + LN_EPS) * ln2g_ref[...] + ln2b_ref[...]

    # ---- LM head: lane-dense (VOCAB padded to 128), unmasked full-width store ----
    logits_ref[...] = jnp.dot(x.astype(jnp.bfloat16), wlm_ref[...],
                              preferred_element_type=jnp.float32)


def init_params(key):
    ks = jax.random.split(key, 6)
    p = {
        "emb": jax.random.normal(ks[0], (VOCAB, HIDDEN), jnp.float32) * 0.02,
        "pos": jax.random.normal(ks[1], (SEQ, HIDDEN), jnp.float32) * 0.02,
        "wqkv": jax.random.normal(ks[2], (HIDDEN, 3 * HIDDEN), jnp.float32) * (1.0 / math.sqrt(HIDDEN)),
        "wo": jax.random.normal(ks[3], (HIDDEN, HIDDEN), jnp.float32) * (1.0 / math.sqrt(HIDDEN)),
        "w1": jax.random.normal(ks[4], (HIDDEN, FFN), jnp.float32) * (1.0 / math.sqrt(HIDDEN)),
        "w2": jax.random.normal(ks[5], (FFN, HIDDEN), jnp.float32) * (1.0 / math.sqrt(FFN)),
        "ln1g": jnp.ones((1, HIDDEN), jnp.float32),
        "ln1b": jnp.zeros((1, HIDDEN), jnp.float32),
        "ln2g": jnp.ones((1, HIDDEN), jnp.float32),
        "ln2b": jnp.zeros((1, HIDDEN), jnp.float32),
    }
    p["wlm"] = jax.random.normal(jax.random.PRNGKey(42), (HIDDEN, VOCAB), jnp.float32) * 0.02
    return p


@jax.jit
def torchscript_wrapper_forward(params, input_ids, attention_mask):
    """Equivalent of TorchScriptWrapper.forward: returns logits (B, S, VOCAB)."""
    B, S = input_ids.shape
    assert S == SEQ
    BS = B * S

    # glue: embedding gather + positional embedding (plain JAX)
    # TODO(synk): could fold the row gather in-kernel via SMEM-prefetched ids; kept as glue.
    x = params["emb"][input_ids] + params["pos"][None, :, :]         # (B, S, D) f32
    x_flat = x.reshape(BS, HIDDEN)

    # block-diagonal additive bias: query i attends key j iff same batch AND key unpadded
    batch_of = jnp.repeat(jnp.arange(B, dtype=jnp.int32), S)          # (BS,)
    same_batch = batch_of[:, None] == batch_of[None, :]               # (BS, BS)
    key_ok = (attention_mask.reshape(BS) > 0)[None, :]                # (1, BS)
    bias = jnp.where(same_batch & key_ok, 0.0, NEG_INF).astype(jnp.float32)

    # kernel-layout weights (heads on leading axis; bf16 MXU operands; padded LM head)
    wqkv = params["wqkv"]
    wq_h = wqkv[:, 0 * HIDDEN:1 * HIDDEN].reshape(HIDDEN, HEADS, HEAD_DIM).transpose(1, 0, 2)
    wk_h = wqkv[:, 1 * HIDDEN:2 * HIDDEN].reshape(HIDDEN, HEADS, HEAD_DIM).transpose(1, 0, 2)
    wv_h = wqkv[:, 2 * HIDDEN:3 * HIDDEN].reshape(HIDDEN, HEADS, HEAD_DIM).transpose(1, 0, 2)
    wo_h = params["wo"].reshape(HEADS, HEAD_DIM, HIDDEN)
    wlm_pad = jnp.pad(params["wlm"], ((0, 0), (0, VOCAB_PAD - VOCAB)))

    bf = jnp.bfloat16
    wq_h, wk_h, wv_h, wo_h = wq_h.astype(bf), wk_h.astype(bf), wv_h.astype(bf), wo_h.astype(bf)
    w1, w2, wlm_pad = params["w1"].astype(bf), params["w2"].astype(bf), wlm_pad.astype(bf)

    full = lambda a: pl.BlockSpec(a.shape, lambda i: (0,) * a.ndim)

    logits_flat = pl.pallas_call(
        _transformer_lm_kernel,
        out_shape=jax.ShapeDtypeStruct((BS, VOCAB_PAD), jnp.float32),
        grid=(1,),                                   # single invocation for the whole batch
        in_specs=[
            full(x_flat),                            # (BS, D) activations
            full(bias),                              # (BS, BS) block-diag mask bias
            full(wq_h), full(wk_h), full(wv_h), full(wo_h),
            full(params["ln1g"]), full(params["ln1b"]),
            full(w1), full(w2),
            full(params["ln2g"]), full(params["ln2b"]),
            full(wlm_pad),
        ],
        out_specs=pl.BlockSpec((BS, VOCAB_PAD), lambda i: (0, 0)),
        compiler_params=pltpu.CompilerParams(
            dimension_semantics=("arbitrary",)),     # tiny batch: keep on one TensorCore
    )(x_flat, bias, wq_h, wk_h, wv_h, wo_h,
      params["ln1g"], params["ln1b"], w1, w2,
      params["ln2g"], params["ln2b"], wlm_pad)

    # un-pad vocab and restore (B, S, VOCAB)
    return logits_flat.reshape(B, S, VOCAB_PAD)[..., :VOCAB]


if __name__ == "__main__":
    key = jax.random.PRNGKey(0)
    pkey, ikey = jax.random.split(key)

    params = init_params(pkey)

    B = 2
    input_ids = jax.random.randint(ikey, (B, SEQ), 0, VOCAB, dtype=jnp.int32)
    # second sequence has 3 trailing padding tokens masked out
    attention_mask = jnp.array(
        [[1, 1, 1, 1, 1, 1, 1, 1],
         [1, 1, 1, 1, 1, 0, 0, 0]], dtype=jnp.int32)

    logits = torchscript_wrapper_forward(params, input_ids, attention_mask)
    logits = jax.block_until_ready(logits)

    assert logits.shape == (B, SEQ, VOCAB)
    assert logits.dtype == jnp.float32
    assert bool(jnp.all(jnp.isfinite(logits)))
    print("KERNEL_OK")
</pallas_src>

<mosaic_0001>
module attributes {stable_mosaic.version = 11 : i64} {
  func.func @_transformer_lm_kernel(%arg0: i32, %arg1: memref<16x32xf32, #tpu.memory_space<vmem>>, %arg2: memref<16x16xf32, #tpu.memory_space<vmem>>, %arg3: memref<2x32x16xbf16, #tpu.memory_space<vmem>>, %arg4: memref<2x32x16xbf16, #tpu.memory_space<vmem>>, %arg5: memref<2x32x16xbf16, #tpu.memory_space<vmem>>, %arg6: memref<2x16x32xbf16, #tpu.memory_space<vmem>>, %arg7: memref<1x32xf32, #tpu.memory_space<vmem>>, %arg8: memref<1x32xf32, #tpu.memory_space<vmem>>, %arg9: memref<32x128xbf16, #tpu.memory_space<vmem>>, %arg10: memref<128x32xbf16, #tpu.memory_space<vmem>>, %arg11: memref<1x32xf32, #tpu.memory_space<vmem>>, %arg12: memref<1x32xf32, #tpu.memory_space<vmem>>, %arg13: memref<32x128xbf16, #tpu.memory_space<vmem>>, %arg14: memref<16x128xf32, #tpu.memory_space<vmem>>) attributes {dimension_semantics = [#tpu.dimension_semantics<arbitrary>], iteration_bounds = array<i64: 1>, scalar_prefetch = 0 : i64, scratch_operands = 0 : i64, tpu.core_type = #tpu.core_type<tc>, window_params = [{pipeline_mode = #tpu.pipeline_mode<synchronous>, transform_indices = @transform_0, window_bounds = array<i64: 16, 32>}, {pipeline_mode = #tpu.pipeline_mode<synchronous>, transform_indices = @transform_1, window_bounds = array<i64: 16, 16>}, {pipeline_mode = #tpu.pipeline_mode<synchronous>, transform_indices = @transform_2, window_bounds = array<i64: 2, 32, 16>}, {pipeline_mode = #tpu.pipeline_mode<synchronous>, transform_indices = @transform_3, window_bounds = array<i64: 2, 32, 16>}, {pipeline_mode = #tpu.pipeline_mode<synchronous>, transform_indices = @transform_4, window_bounds = array<i64: 2, 32, 16>}, {pipeline_mode = #tpu.pipeline_mode<synchronous>, transform_indices = @transform_5, window_bounds = array<i64: 2, 16, 32>}, {pipeline_mode = #tpu.pipeline_mode<synchronous>, transform_indices = @transform_6, window_bounds = array<i64: 1, 32>}, {pipeline_mode = #tpu.pipeline_mode<synchronous>, transform_indices = @transform_7, window_bounds = array<i64: 1, 32>}, {pipeline_mode = #tpu.pipeline_mode<synchronous>, transform_indices = @transform_8, window_bounds = array<i64: 32, 128>}, {pipeline_mode = #tpu.pipeline_mode<synchronous>, transform_indices = @transform_9, window_bounds = array<i64: 128, 32>}, {pipeline_mode = #tpu.pipeline_mode<synchronous>, transform_indices = @transform_10, window_bounds = array<i64: 1, 32>}, {pipeline_mode = #tpu.pipeline_mode<synchronous>, transform_indices = @transform_11, window_bounds = array<i64: 1, 32>}, {pipeline_mode = #tpu.pipeline_mode<synchronous>, transform_indices = @transform_12, window_bounds = array<i64: 32, 128>}, {pipeline_mode = #tpu.pipeline_mode<synchronous>, transform_indices = @transform_13, window_bounds = array<i64: 16, 128>}]} {
    %c0 = arith.constant 0 : index
    %c0_0 = arith.constant 0 : index
    %0 = vector.load %arg1[%c0, %c0_0] : memref<16x32xf32, #tpu.memory_space<vmem>>, vector<16x32xf32>
    %c0_1 = arith.constant 0 : index
    %c0_2 = arith.constant 0 : index
    %1 = vector.load %arg2[%c0_1, %c0_2] : memref<16x16xf32, #tpu.memory_space<vmem>>, vector<16x16xf32>
    %2 = arith.truncf %0 : vector<16x32xf32> to vector<16x32xbf16>
    %cst = arith.constant 0.000000e+00 : f32
    %3 = vector.broadcast %cst : f32 to vector<16x32xf32>
    %c0_3 = arith.constant 0 : index
    %c0_4 = arith.constant 0 : index
    %c0_5 = arith.constant 0 : index
    %4 = vector.load %arg3[%c0_3, %c0_4, %c0_5] : memref<2x32x16xbf16, #tpu.memory_space<vmem>>, vector<1x32x16xbf16>
    %5 = vector.shape_cast %4 : vector<1x32x16xbf16> to vector<32x16xbf16>
    %cst_6 = arith.constant dense<0.000000e+00> : vector<16x16xf32>
    %6 = tpu.matmul %2, %5, %cst_6 {dimension_numbers = #tpu.dot_dimension_numbers<[1], [0], [0], [1], [0, 0, 1, 1], [], []>} : vector<16x32xbf16>, vector<32x16xbf16>, vector<16x16xf32> -> vector<16x16xf32>
    %c0_7 = arith.constant 0 : index
    %c0_8 = arith.constant 0 : index
    %c0_9 = arith.constant 0 : index
    %7 = vector.load %arg4[%c0_7, %c0_8, %c0_9] : memref<2x32x16xbf16, #tpu.memory_space<vmem>>, vector<1x32x16xbf16>
    %8 = vector.shape_cast %7 : vector<1x32x16xbf16> to vector<32x16xbf16>
    %cst_10 = arith.constant dense<0.000000e+00> : vector<16x16xf32>
    %9 = tpu.matmul %2, %8, %cst_10 {dimension_numbers = #tpu.dot_dimension_numbers<[1], [0], [0], [1], [0, 0, 1, 1], [], []>} : vector<16x32xbf16>, vector<32x16xbf16>, vector<16x16xf32> -> vector<16x16xf32>
    %c0_11 = arith.constant 0 : index
    %c0_12 = arith.constant 0 : index
    %c0_13 = arith.constant 0 : index
    %10 = vector.load %arg5[%c0_11, %c0_12, %c0_13] : memref<2x32x16xbf16, #tpu.memory_space<vmem>>, vector<1x32x16xbf16>
    %11 = vector.shape_cast %10 : vector<1x32x16xbf16> to vector<32x16xbf16>
    %cst_14 = arith.constant dense<0.000000e+00> : vector<16x16xf32>
    %12 = tpu.matmul %2, %11, %cst_14 {dimension_numbers = #tpu.dot_dimension_numbers<[1], [0], [0], [1], [0, 0, 1, 1], [], []>} : vector<16x32xbf16>, vector<32x16xbf16>, vector<16x16xf32> -> vector<16x16xf32>
    %13 = arith.truncf %6 : vector<16x16xf32> to vector<16x16xbf16>
    %14 = arith.truncf %9 : vector<16x16xf32> to vector<16x16xbf16>
    %cst_15 = arith.constant dense<0.000000e+00> : vector<16x16xf32>
    %15 = tpu.matmul %13, %14, %cst_15 {dimension_numbers = #tpu.dot_dimension_numbers<[1], [1], [0], [0], [0, 0, 1, 0], [], []>} : vector<16x16xbf16>, vector<16x16xbf16>, vector<16x16xf32> -> vector<16x16xf32>
    %cst_16 = arith.constant 2.500000e-01 : f32
    %16 = vector.broadcast %cst_16 : f32 to vector<16x16xf32>
    %17 = arith.mulf %15, %16 : vector<16x16xf32>
    %18 = arith.addf %17, %1 : vector<16x16xf32>
    %cst_17 = arith.constant dense<0xFF800000> : vector<16xf32>
    %19 = vector.multi_reduction <maximumf>, %18, %cst_17 [1] : vector<16x16xf32> to vector<16xf32>
    %20 = vector.shape_cast %19 : vector<16xf32> to vector<16x1xf32>
    %21 = vector.broadcast %20 : vector<16x1xf32> to vector<16x16xf32>
    %22 = arith.subf %18, %21 : vector<16x16xf32>
    %23 = math.exp %22 : vector<16x16xf32>
    %cst_18 = arith.constant dense<0.000000e+00> : vector<16xf32>
    %24 = vector.multi_reduction <add>, %23, %cst_18 [1] : vector<16x16xf32> to vector<16xf32>
    %25 = vector.shape_cast %24 : vector<16xf32> to vector<16x1xf32>
    %26 = tpu.reciprocal %25 {approx = true} : vector<16x1xf32> -> vector<16x1xf32>
    %27 = vector.broadcast %26 : vector<16x1xf32> to vector<16x16xf32>
    %28 = arith.mulf %23, %27 : vector<16x16xf32>
    %29 = arith.truncf %28 : vector<16x16xf32> to vector<16x16xbf16>
    %30 = arith.truncf %12 : vector<16x16xf32> to vector<16x16xbf16>
    %cst_19 = arith.constant dense<0.000000e+00> : vector<16x16xf32>
    %31 = tpu.matmul %29, %30, %cst_19 {dimension_numbers = #tpu.dot_dimension_numbers<[1], [0], [0], [1], [0, 0, 1, 1], [], []>} : vector<16x16xbf16>, vector<16x16xbf16>, vector<16x16xf32> -> vector<16x16xf32>
    %32 = arith.truncf %31 : vector<16x16xf32> to vector<16x16xbf16>
    %c0_20 = arith.constant 0 : index
    %c0_21 = arith.constant 0 : index
    %c0_22 = arith.constant 0 : index
    %33 = vector.load %arg6[%c0_20, %c0_21, %c0_22] : memref<2x16x32xbf16, #tpu.memory_space<vmem>>, vector<1x16x32xbf16>
    %34 = vector.shape_cast %33 : vector<1x16x32xbf16> to vector<16x32xbf16>
    %cst_23 = arith.constant dense<0.000000e+00> : vector<16x32xf32>
    %35 = tpu.matmul %32, %34, %cst_23 {dimension_numbers = #tpu.dot_dimension_numbers<[1], [0], [0], [1], [0, 0, 1, 1], [], []>} : vector<16x16xbf16>, vector<16x32xbf16>, vector<16x32xf32> -> vector<16x32xf32>
    %36 = arith.addf %3, %35 : vector<16x32xf32>
    %c1 = arith.constant 1 : index
    %c0_24 = arith.constant 0 : index
    %c0_25 = arith.constant 0 : index
    %37 = vector.load %arg3[%c1, %c0_24, %c0_25] : memref<2x32x16xbf16, #tpu.memory_space<vmem>>, vector<1x32x16xbf16>
    %38 = vector.shape_cast %37 : vector<1x32x16xbf16> to vector<32x16xbf16>
    %cst_26 = arith.constant dense<0.000000e+00> : vector<16x16xf32>
    %39 = tpu.matmul %2, %38, %cst_26 {dimension_numbers = #tpu.dot_dimension_numbers<[1], [0], [0], [1], [0, 0, 1, 1], [], []>} : vector<16x32xbf16>, vector<32x16xbf16>, vector<16x16xf32> -> vector<16x16xf32>
    %c1_27 = arith.constant 1 : index
    %c0_28 = arith.constant 0 : index
    %c0_29 = arith.constant 0 : index
    %40 = vector.load %arg4[%c1_27, %c0_28, %c0_29] : memref<2x32x16xbf16, #tpu.memory_space<vmem>>, vector<1x32x16xbf16>
    %41 = vector.shape_cast %40 : vector<1x32x16xbf16> to vector<32x16xbf16>
    %cst_30 = arith.constant dense<0.000000e+00> : vector<16x16xf32>
    %42 = tpu.matmul %2, %41, %cst_30 {dimension_numbers = #tpu.dot_dimension_numbers<[1], [0], [0], [1], [0, 0, 1, 1], [], []>} : vector<16x32xbf16>, vector<32x16xbf16>, vector<16x16xf32> -> vector<16x16xf32>
    %c1_31 = arith.constant 1 : index
    %c0_32 = arith.constant 0 : index
    %c0_33 = arith.constant 0 : index
    %43 = vector.load %arg5[%c1_31, %c0_32, %c0_33] : memref<2x32x16xbf16, #tpu.memory_space<vmem>>, vector<1x32x16xbf16>
    %44 = vector.shape_cast %43 : vector<1x32x16xbf16> to vector<32x16xbf16>
    %cst_34 = arith.constant dense<0.000000e+00> : vector<16x16xf32>
    %45 = tpu.matmul %2, %44, %cst_34 {dimension_numbers = #tpu.dot_dimension_numbers<[1], [0], [0], [1], [0, 0, 1, 1], [], []>} : vector<16x32xbf16>, vector<32x16xbf16>, vector<16x16xf32> -> vector<16x16xf32>
    %46 = arith.truncf %39 : vector<16x16xf32> to vector<16x16xbf16>
    %47 = arith.truncf %42 : vector<16x16xf32> to vector<16x16xbf16>
    %cst_35 = arith.constant dense<0.000000e+00> : vector<16x16xf32>
    %48 = tpu.matmul %46, %47, %cst_35 {dimension_numbers = #tpu.dot_dimension_numbers<[1], [1], [0], [0], [0, 0, 1, 0], [], []>} : vector<16x16xbf16>, vector<16x16xbf16>, vector<16x16xf32> -> vector<16x16xf32>
    %cst_36 = arith.constant 2.500000e-01 : f32
    %49 = vector.broadcast %cst_36 : f32 to vector<16x16xf32>
    %50 = arith.mulf %48, %49 : vector<16x16xf32>
    %51 = arith.addf %50, %1 : vector<16x16xf32>
    %cst_37 = arith.constant dense<0xFF800000> : vector<16xf32>
    %52 = vector.multi_reduction <maximumf>, %51, %cst_37 [1] : vector<16x16xf32> to vector<16xf32>
    %53 = vector.shape_cast %52 : vector<16xf32> to vector<16x1xf32>
    %54 = vector.broadcast %53 : vector<16x1xf32> to vector<16x16xf32>
    %55 = arith.subf %51, %54 : vector<16x16xf32>
    %56 = math.exp %55 : vector<16x16xf32>
    %cst_38 = arith.constant dense<0.000000e+00> : vector<16xf32>
    %57 = vector.multi_reduction <add>, %56, %cst_38 [1] : vector<16x16xf32> to vector<16xf32>
    %58 = vector.shape_cast %57 : vector<16xf32> to vector<16x1xf32>
    %59 = tpu.reciprocal %58 {approx = true} : vector<16x1xf32> -> vector<16x1xf32>
    %60 = vector.broadcast %59 : vector<16x1xf32> to vector<16x16xf32>
    %61 = arith.mulf %56, %60 : vector<16x16xf32>
    %62 = arith.truncf %61 : vector<16x16xf32> to vector<16x16xbf16>
    %63 = arith.truncf %45 : vector<16x16xf32> to vector<16x16xbf16>
    %cst_39 = arith.constant dense<0.000000e+00> : vector<16x16xf32>
    %64 = tpu.matmul %62, %63, %cst_39 {dimension_numbers = #tpu.dot_dimension_numbers<[1], [0], [0], [1], [0, 0, 1, 1], [], []>} : vector<16x16xbf16>, vector<16x16xbf16>, vector<16x16xf32> -> vector<16x16xf32>
    %65 = arith.truncf %64 : vector<16x16xf32> to vector<16x16xbf16>
    %c1_40 = arith.constant 1 : index
    %c0_41 = arith.constant 0 : index
    %c0_42 = arith.constant 0 : index
    %66 = vector.load %arg6[%c1_40, %c0_41, %c0_42] : memref<2x16x32xbf16, #tpu.memory_space<vmem>>, vector<1x16x32xbf16>
    %67 = vector.shape_cast %66 : vector<1x16x32xbf16> to vector<16x32xbf16>
    %cst_43 = arith.constant dense<0.000000e+00> : vector<16x32xf32>
    %68 = tpu.matmul %65, %67, %cst_43 {dimension_numbers = #tpu.dot_dimension_numbers<[1], [0], [0], [1], [0, 0, 1, 1], [], []>} : vector<16x16xbf16>, vector<16x32xbf16>, vector<16x32xf32> -> vector<16x32xf32>
    %69 = arith.addf %36, %68 : vector<16x32xf32>
    %70 = arith.addf %0, %69 : vector<16x32xf32>
    %cst_44 = arith.constant dense<0.000000e+00> : vector<16xf32>
    %71 = vector.multi_reduction <add>, %70, %cst_44 [1] : vector<16x32xf32> to vector<16xf32>
    %72 = vector.shape_cast %71 : vector<16xf32> to vector<16x1xf32>
    %cst_45 = arith.constant 3.200000e+01 : f32
    %73 = vector.broadcast %cst_45 : f32 to vector<16x1xf32>
    %74 = arith.divf %72, %73 : vector<16x1xf32>
    %75 = vector.broadcast %74 : vector<16x1xf32> to vector<16x32xf32>
    %76 = arith.subf %70, %75 : vector<16x32xf32>
    %77 = vector.broadcast %74 : vector<16x1xf32> to vector<16x32xf32>
    %78 = arith.subf %70, %77 : vector<16x32xf32>
    %79 = arith.mulf %76, %78 : vector<16x32xf32>
    %cst_46 = arith.constant dense<0.000000e+00> : vector<16xf32>
    %80 = vector.multi_reduction <add>, %79, %cst_46 [1] : vector<16x32xf32> to vector<16xf32>
    %81 = vector.shape_cast %80 : vector<16xf32> to vector<16x1xf32>
    %cst_47 = arith.constant 3.200000e+01 : f32
    %82 = vector.broadcast %cst_47 : f32 to vector<16x1xf32>
    %83 = arith.divf %81, %82 : vector<16x1xf32>
    %84 = vector.broadcast %74 : vector<16x1xf32> to vector<16x32xf32>
    %85 = arith.subf %70, %84 : vector<16x32xf32>
    %cst_48 = arith.constant 9.99999974E-6 : f32
    %86 = vector.broadcast %cst_48 : f32 to vector<16x1xf32>
    %87 = arith.addf %83, %86 : vector<16x1xf32>
    %88 = math.rsqrt %87 : vector<16x1xf32>
    %89 = vector.broadcast %88 : vector<16x1xf32> to vector<16x32xf32>
    %90 = arith.mulf %85, %89 : vector<16x32xf32>
    %c0_49 = arith.constant 0 : index
    %c0_50 = arith.constant 0 : index
    %91 = vector.load %arg7[%c0_49, %c0_50] : memref<1x32xf32, #tpu.memory_space<vmem>>, vector<1x32xf32>
    %92 = vector.broadcast %91 : vector<1x32xf32> to vector<16x32xf32>
    %93 = arith.mulf %90, %92 : vector<16x32xf32>
    %c0_51 = arith.constant 0 : index
    %c0_52 = arith.constant 0 : index
    %94 = vector.load %arg8[%c0_51, %c0_52] : memref<1x32xf32, #tpu.memory_space<vmem>>, vector<1x32xf32>
    %95 = vector.broadcast %94 : vector<1x32xf32> to vector<16x32xf32>
    %96 = arith.addf %93, %95 : vector<16x32xf32>
    %97 = arith.truncf %96 : vector<16x32xf32> to vector<16x32xbf16>
    %c0_53 = arith.constant 0 : index
    %c0_54 = arith.constant 0 : index
    %98 = vector.load %arg9[%c0_53, %c0_54] : memref<32x128xbf16, #tpu.memory_space<vmem>>, vector<32x128xbf16>
    %cst_55 = arith.constant dense<0.000000e+00> : vector<16x128xf32>
    %99 = tpu.matmul %97, %98, %cst_55 {dimension_numbers = #tpu.dot_dimension_numbers<[1], [0], [0], [1], [0, 0, 1, 1], [], []>} : vector<16x32xbf16>, vector<32x128xbf16>, vector<16x128xf32> -> vector<16x128xf32>
    %cst_56 = arith.constant 0.000000e+00 : f32
    %100 = vector.broadcast %cst_56 : f32 to vector<16x128xf32>
    %101 = arith.maximumf %99, %100 : vector<16x128xf32>
    %102 = arith.truncf %101 : vector<16x128xf32> to vector<16x128xbf16>
    %c0_57 = arith.constant 0 : index
    %c0_58 = arith.constant 0 : index
    %103 = vector.load %arg10[%c0_57, %c0_58] : memref<128x32xbf16, #tpu.memory_space<vmem>>, vector<128x32xbf16>
    %cst_59 = arith.constant dense<0.000000e+00> : vector<16x32xf32>
    %104 = tpu.matmul %102, %103, %cst_59 {dimension_numbers = #tpu.dot_dimension_numbers<[1], [0], [0], [1], [0, 0, 1, 1], [], []>} : vector<16x128xbf16>, vector<128x32xbf16>, vector<16x32xf32> -> vector<16x32xf32>
    %105 = arith.addf %96, %104 : vector<16x32xf32>
    %cst_60 = arith.constant dense<0.000000e+00> : vector<16xf32>
    %106 = vector.multi_reduction <add>, %105, %cst_60 [1] : vector<16x32xf32> to vector<16xf32>
    %107 = vector.shape_cast %106 : vector<16xf32> to vector<16x1xf32>
    %cst_61 = arith.constant 3.200000e+01 : f32
    %108 = vector.broadcast %cst_61 : f32 to vector<16x1xf32>
    %109 = arith.divf %107, %108 : vector<16x1xf32>
    %110 = vector.broadcast %109 : vector<16x1xf32> to vector<16x32xf32>
    %111 = arith.subf %105, %110 : vector<16x32xf32>
    %112 = vector.broadcast %109 : vector<16x1xf32> to vector<16x32xf32>
    %113 = arith.subf %105, %112 : vector<16x32xf32>
    %114 = arith.mulf %111, %113 : vector<16x32xf32>
    %cst_62 = arith.constant dense<0.000000e+00> : vector<16xf32>
    %115 = vector.multi_reduction <add>, %114, %cst_62 [1] : vector<16x32xf32> to vector<16xf32>
    %116 = vector.shape_cast %115 : vector<16xf32> to vector<16x1xf32>
    %cst_63 = arith.constant 3.200000e+01 : f32
    %117 = vector.broadcast %cst_63 : f32 to vector<16x1xf32>
    %118 = arith.divf %116, %117 : vector<16x1xf32>
    %119 = vector.broadcast %109 : vector<16x1xf32> to vector<16x32xf32>
    %120 = arith.subf %105, %119 : vector<16x32xf32>
    %cst_64 = arith.constant 9.99999974E-6 : f32
    %121 = vector.broadcast %cst_64 : f32 to vector<16x1xf32>
    %122 = arith.addf %118, %121 : vector<16x1xf32>
    %123 = math.rsqrt %122 : vector<16x1xf32>
    %124 = vector.broadcast %123 : vector<16x1xf32> to vector<16x32xf32>
    %125 = arith.mulf %120, %124 : vector<16x32xf32>
    %c0_65 = arith.constant 0 : index
    %c0_66 = arith.constant 0 : index
    %126 = vector.load %arg11[%c0_65, %c0_66] : memref<1x32xf32, #tpu.memory_space<vmem>>, vector<1x32xf32>
    %127 = vector.broadcast %126 : vector<1x32xf32> to vector<16x32xf32>
    %128 = arith.mulf %125, %127 : vector<16x32xf32>
    %c0_67 = arith.constant 0 : index
    %c0_68 = arith.constant 0 : index
    %129 = vector.load %arg12[%c0_67, %c0_68] : memref<1x32xf32, #tpu.memory_space<vmem>>, vector<1x32xf32>
    %130 = vector.broadcast %129 : vector<1x32xf32> to vector<16x32xf32>
    %131 = arith.addf %128, %130 : vector<16x32xf32>
    %132 = arith.truncf %131 : vector<16x32xf32> to vector<16x32xbf16>
    %c0_69 = arith.constant 0 : index
    %c0_70 = arith.constant 0 : index
    %133 = vector.load %arg13[%c0_69, %c0_70] : memref<32x128xbf16, #tpu.memory_space<vmem>>, vector<32x128xbf16>
    %cst_71 = arith.constant dense<0.000000e+00> : vector<16x128xf32>
    %134 = tpu.matmul %132, %133, %cst_71 {dimension_numbers = #tpu.dot_dimension_numbers<[1], [0], [0], [1], [0, 0, 1, 1], [], []>} : vector<16x32xbf16>, vector<32x128xbf16>, vector<16x128xf32> -> vector<16x128xf32>
    %c0_72 = arith.constant 0 : index
    %c0_73 = arith.constant 0 : index
    %135 = vector.load %arg14[%c0_72, %c0_73] : memref<16x128xf32, #tpu.memory_space<vmem>>, vector<16x128xf32>
    tpu.vector_store %arg14[%c0_72, %c0_73], %134 {strides = array<i32>} : memref<16x128xf32, #tpu.memory_space<vmem>>, vector<16x128xf32>,
    return
  }
  func.func @transform_0(%arg0: i32) -> (i32, i32) {
    %c0_i32 = arith.constant 0 : i32
    %c0_i32_0 = arith.constant 0 : i32
    %c0_i32_1 = arith.constant 0 : i32
    return %c0_i32, %c0_i32_0 : i32, i32
  }
  func.func @transform_1(%arg0: i32) -> (i32, i32) {
    %c0_i32 = arith.constant 0 : i32
    %c0_i32_0 = arith.constant 0 : i32
    %c0_i32_1 = arith.constant 0 : i32
    return %c0_i32, %c0_i32_0 : i32, i32
  }
  func.func @transform_2(%arg0: i32) -> (i32, i32, i32) {
    %c0_i32 = arith.constant 0 : i32
    %c0_i32_0 = arith.constant 0 : i32
    %c0_i32_1 = arith.constant 0 : i32
    %c0_i32_2 = arith.constant 0 : i32
    return %c0_i32, %c0_i32_0, %c0_i32_1 : i32, i32, i32
  }
  func.func @transform_3(%arg0: i32) -> (i32, i32, i32) {
    %c0_i32 = arith.constant 0 : i32
    %c0_i32_0 = arith.constant 0 : i32
    %c0_i32_1 = arith.constant 0 : i32
    %c0_i32_2 = arith.constant 0 : i32
    return %c0_i32, %c0_i32_0, %c0_i32_1 : i32, i32, i32
  }
  func.func @transform_4(%arg0: i32) -> (i32, i32, i32) {
    %c0_i32 = arith.constant 0 : i32
    %c0_i32_0 = arith.constant 0 : i32
    %c0_i32_1 = arith.constant 0 : i32
    %c0_i32_2 = arith.constant 0 : i32
    return %c0_i32, %c0_i32_0, %c0_i32_1 : i32, i32, i32
  }
  func.func @transform_5(%arg0: i32) -> (i32, i32, i32) {
    %c0_i32 = arith.constant 0 : i32
    %c0_i32_0 = arith.constant 0 : i32
    %c0_i32_1 = arith.constant 0 : i32
    %c0_i32_2 = arith.constant 0 : i32
    return %c0_i32, %c0_i32_0, %c0_i32_1 : i32, i32, i32
  }
  func.func @transform_6(%arg0: i32) -> (i32, i32) {
    %c0_i32 = arith.constant 0 : i32
    %c0_i32_0 = arith.constant 0 : i32
    %c0_i32_1 = arith.constant 0 : i32
    return %c0_i32, %c0_i32_0 : i32, i32
  }
  func.func @transform_7(%arg0: i32) -> (i32, i32) {
    %c0_i32 = arith.constant 0 : i32
    %c0_i32_0 = arith.constant 0 : i32
    %c0_i32_1 = arith.constant 0 : i32
    return %c0_i32, %c0_i32_0 : i32, i32
  }
  func.func @transform_8(%arg0: i32) -> (i32, i32) {
    %c0_i32 = arith.constant 0 : i32
    %c0_i32_0 = arith.constant 0 : i32
    %c0_i32_1 = arith.constant 0 : i32
    return %c0_i32, %c0_i32_0 : i32, i32
  }
  func.func @transform_9(%arg0: i32) -> (i32, i32) {
    %c0_i32 = arith.constant 0 : i32
    %c0_i32_0 = arith.constant 0 : i32
    %c0_i32_1 = arith.constant 0 : i32
    return %c0_i32, %c0_i32_0 : i32, i32
  }
  func.func @transform_10(%arg0: i32) -> (i32, i32) {
    %c0_i32 = arith.constant 0 : i32
    %c0_i32_0 = arith.constant 0 : i32
    %c0_i32_1 = arith.constant 0 : i32
    return %c0_i32, %c0_i32_0 : i32, i32
  }
  func.func @transform_11(%arg0: i32) -> (i32, i32) {
    %c0_i32 = arith.constant 0 : i32
    %c0_i32_0 = arith.constant 0 : i32
    %c0_i32_1 = arith.constant 0 : i32
    return %c0_i32, %c0_i32_0 : i32, i32
  }
  func.func @transform_12(%arg0: i32) -> (i32, i32) {
    %c0_i32 = arith.constant 0 : i32
    %c0_i32_0 = arith.constant 0 : i32
    %c0_i32_1 = arith.constant 0 : i32
    return %c0_i32, %c0_i32_0 : i32, i32
  }
  func.func @transform_13(%arg0: i32) -> (i32, i32) {
    %c0_i32 = arith.constant 0 : i32
    %c0_i32_0 = arith.constant 0 : i32
    %c0_i32_1 = arith.constant 0 : i32
    return %c0_i32, %c0_i32_0 : i32, i32
  }
}

</mosaic_0001>

<bundles_post_ra>
// kernel: torchscript_wrapper_forward.1
= control target key start
LH: loop header
LB: loop body
LE: loop exit
PB: predicated region body
PF: predicated region fallthrough
CT: control target
= control target key end

     0   :  { %s1181_s0 = inlined_call_operand.vmem [shape: f32[16,32], index: 0, kind: input, shape index: {}]   ;;  %s1182_s1 = inlined_call_operand.vmem [shape: f32[16,16], index: 1, kind: input, shape index: {}]   ;;  %s1183_s2 = inlined_call_operand.vmem [shape: bf16[2,32,16], index: 2, kind: input, shape index: {}]   ;;  %s1184_s3 = inlined_call_operand.vmem [shape: bf16[2,32,16], index: 3, kind: input, shape index: {}]   ;;  %s1185_s4 = inlined_call_operand.vmem [shape: bf16[2,32,16], index: 4, kind: input, shape index: {}]   ;;  %s1186_s5 = inlined_call_operand.vmem [shape: bf16[2,16,32], index: 5, kind: input, shape index: {}]   ;;  %s1187_s6 = inlined_call_operand.vmem [shape: f32[1,32], index: 6, kind: input, shape index: {}]   ;;  %s1188_s7 = inlined_call_operand.vmem [shape: f32[1,32], index: 7, kind: input, shape index: {}]   ;;  %s1189_s8 = inlined_call_operand.vmem [shape: bf16[32,128], index: 8, kind: input, shape index: {}]   ;;  %s1190_s9 = inlined_call_operand.vmem [shape: bf16[128,32], index: 9, kind: input, shape index: {}]   ;;  %s1191_s10 = inlined_call_operand.vmem [shape: f32[1,32], index: 10, kind: input, shape index: {}]   ;;  %s1192_s11 = inlined_call_operand.vmem [shape: f32[1,32], index: 11, kind: input, shape index: {}]   ;;  %s1193_s12 = inlined_call_operand.vmem [shape: bf16[32,128], index: 12, kind: input, shape index: {}]   ;;  %s1194_s13 = inlined_call_operand.hbm [shape: f32[16,128], index: 13, kind: output, shape index: {}]  }
   0x1   :  { %v853_v0 = vld [vmem:[%s1184_s3 + $0x8] sm:$0xff]  ;;  %v852_v1 = vld [vmem:[%s1184_s3] sm:$0xff] }
   0x2   :  { %v1019_v2 = vld [vmem:[%s1181_s0] sm:$0xff]  ;;  %v1024_v3 = vld [vmem:[%s1181_s0 + $0x8] sm:$0xff]  ;;  %107 = vmatpush.bf16.msra.mxu3 %v853_v0 }
   0x3   :  { %v851_v4 = vld [vmem:[%s1183_s2 + $0x8] sm:$0xff]  ;;  %v850_v5 = vld [vmem:[%s1183_s2] sm:$0xff] }
   0x4   :  { %77 = vmatpush.bf16.msra.mxu0 %v851_v4 }
   0x5   :  { %18 = vsyncpa [#allocation3], 0  ;;  %v1034_v6 = vpack.c.bf16 %v1024_v3, %v1019_v2  ;;  %vm67_vm0 = vcmask 261120   ;;  %vm147_vm1 = vcmask 130048   ;;  %v855_v14 = vld [vmem:[%s1185_s4 + $0x8] sm:$0xff]  ;;  %v854_v15 = vld [vmem:[%s1185_s4] sm:$0xff] }
   0x6   :  { %108 = vmatpush.bf16.msra.mxu3 %v852_v1  ;;  %137 = vmatpush.bf16.msra.mxu2 %v855_v14  ;;  %v860_v16 = vld [vmem:[%s1184_s3 + $0x18] sm:$0xff]  ;;  %v1056_v18 = vld [vmem:[%s1182_s1] sm:$0xff]  ;;  %v1063_v23 = vld [vmem:[%s1182_s1 + $0x8] sm:$0xff]  ;;  %s706_s27 = sshll.u32 %s1194_s13, 4  ;;  %s707_s27 = int_to_ptr.hbm [resolvable:$true] %s706_s27 }
   0x7   :  { %v859_v27 = vld [vmem:[%s1184_s3 + $0x10] sm:$0xff]  ;;  %v858_v28 = vld [vmem:[%s1183_s2 + $0x18] sm:$0xff]  ;;  %v856_v59 = vld [vmem:[%s1186_s5] sm:$0xff] }
   0x8   :  { %78 = vmatpush.bf16.msra.mxu0 %v850_v5  ;;  %239 = vmatpush.bf16.msra.mxu1 %v858_v28  ;;  %v857_v29 = vld [vmem:[%s1183_s2 + $0x10] sm:$0xff]  ;;  %v862_v48 = vld [vmem:[%s1185_s4 + $0x18] sm:$0xff] }
   0x9   :  { %735 = vmatmul.msk.bf16.vlgmr.msra.gmra.mxu3 %vm67_vm0, %v1034_v6  ;;  %v861_v49 = vld [vmem:[%s1185_s4 + $0x10] sm:$0xff] }
   0xa   :  { %138 = vmatpush.bf16.msra.mxu2 %v854_v15 }
   0xb   :  { %726 = vmatmul.msk.bf16.vlgmr.msra.gmra.mxu0 %vm67_vm0, %v1034_v6 }
   0xc   :  { %240 = vmatpush.bf16.msra.mxu1 %v857_v29  ;;  %v863_v29 = vld [vmem:[%s1186_s5 + $0x8] sm:$0xff] }
   0xd   :  { %744 = vmatmul.msk.bf16.vlgmr.msra.gmra.mxu2 %vm67_vm0, %v1034_v6 }
   0xe   :  { %270 = vmatpush.bf16.msrb.mxu2 %v860_v16 }
   0xf   :  { %759 = vmatmul.msk.bf16.vlgmr.msra.gmra.mxu1 %vm67_vm0, %v1034_v6 }
  0x12   :  { %271 = vmatpush.bf16.msrb.mxu2 %v859_v27 }
  0x16   :  { %396 = vmatpush.bf16.msra.mxu2 %v863_v29 }
  0x1d   :  { %772 = vmatmul.msk.bf16.vlgmr.msrb.gmra.mxu2 %vm67_vm0, %v1034_v6 }
  0x88   :  { %v80_v8 = vpop.f32.mrf.mxu0 }
  0x8c   :  { %v110_v7 = vpop.f32.mrf.mxu3  ;;  %v242_v56 = vpop.f32.mrf.mxu1 }
  0x90   :  { %v82_v12 = vpop.f32.mrf.mxu0  ;;  %v140_v40 = vpop.f32.mrf.mxu2 }
  0x91   :  { %v145_v13 = vpack.c.bf16 %v82_v12, %v80_v8 }
  0x94   :  { %v112_v9 = vpop.f32.mrf.mxu3  ;;  %v244_v57 = vpop.f32.mrf.mxu1 }
  0x95   :  { %v146_v10 = vpack.c.bf16 %v112_v9, %v110_v7  ;;  %v309_v58 = vpack.c.bf16 %v244_v57, %v242_v56 }
  0x97   :  { %v152_v11 = vsel %vm147_vm1, %v146_v10, 0 }
  0x98   :  { %161 = vmatpush.bf16.xpose.msrb.mxu3 %v152_v11  ;;  %v142_v41 = vpop.f32.mrf.mxu2 }
  0x99   :  { %v195_v42 = vpack.c.bf16 %v142_v41, %v140_v40 }
  0x9b   :  { %206 = vmatpush.bf16.msrb.mxu0 %v195_v42 }
  0x9f   :  { %745 = vmatmul.msk.bf16.vlgmr.msrb.gmra.mxu3 %vm147_vm1, %v145_v13 }
  0xa0   :  { %v273_v43 = vpop.f32.mrf.mxu2  ;;  %301 = vmatpush.bf16.msra.mxu3 %v862_v48 }
  0xa4   :  { %302 = vmatpush.bf16.msra.mxu3 %v861_v49 }
  0xa8   :  { %v275_v44 = vpop.f32.mrf.mxu2  ;;  %419 = vmatpush.bf16.msrb.mxu3 %v856_v59 }
  0xa9   :  { %v310_v45 = vpack.c.bf16 %v275_v44, %v273_v43  ;;  %v936_v43 = vmov 32.0  }
  0xab   :  { %v315_v46 = vsel %vm147_vm1, %v310_v45, 0 }
  0xac   :  { %324 = vmatpush.bf16.xpose.msra.mxu0 %v315_v46 }
  0xaf   :  { %785 = vmatmul.msk.bf16.vlgmr.msra.gmra.mxu3 %vm67_vm0, %v1034_v6 }
 0x122   :  { %v163_v17 = vpop.f32.mrf.mxu3 }
 0x123   :  { %v168_v19 = vmul.f32 0.25, %v163_v17 }
 0x125   :  { %v170_v20 = vadd.f32 %v168_v19, %v1056_v18 }
 0x127   :  { %v172_v21 = vsel %vm147_vm1, %v170_v20, -inf }
 0x128   :  { %173 = vmax.xlane.f32.xlu0 %v172_v21 }
 0x12a   :  { %v165_v22 = vpop.f32.mrf.mxu3 }
 0x12b   :  { %v169_v24 = vmul.f32 0.25, %v165_v22 }
 0x12d   :  { %v171_v25 = vadd.f32 %v169_v24, %v1063_v23 }
 0x12f   :  { %v175_v26 = vsel %vm147_vm1, %v171_v25, -inf }
 0x130   :  { %176 = vmax.xlane.f32.xlu0 %v175_v26 }
 0x132   :  { %v304_v60 = vpop.f32.mrf.mxu3 }
 0x13a   :  { %v306_v62 = vpop.f32.mrf.mxu3 }
 0x13b   :  { %v358_v0 = vpack.c.bf16 %v306_v62, %v304_v60 }
 0x13d   :  { %369 = vmatpush.bf16.msrb.mxu1 %v358_v0 }
 0x19b   :  { %v174_v30 = vpop.xlane.xlu0 %173 }
 0x19c   :  { %v178_v31 = vsub.f32 %v170_v20, %v174_v30 }
 0x19e   :  { %v180_v32 = vmul.f32 1.442695, %v178_v31 }
 0x1a0   :  { %884 = vpow2.f32 %v180_v32 }
 0x1a3   :  { %v177_v33 = vpop.xlane.xlu0 %176 }
 0x1a4   :  { %v179_v34 = vsub.f32 %v171_v25, %v177_v33 }
 0x1a6   :  { %v885_v35 = vpop.eup %884  ;;  %v182_v36 = vmul.f32 1.442695, %v179_v34 }
 0x1a7   :  { %v184_v37 = vsel %vm147_vm1, %v885_v35, 0.0 }
 0x1a8   :  { %886 = vpow2.f32 %v182_v36  ;;  %185 = vadd.xlane.f32.xlu1 %v184_v37 }
 0x1ae   :  { %v887_v38 = vpop.eup %886 }
 0x1af   :  { %v187_v39 = vsel %vm147_vm1, %v887_v38, 0.0 }
 0x1b0   :  { %188 = vadd.xlane.f32.xlu1 %v187_v39 }
 0x21b   :  { %v186_v47 = vpop.xlane.xlu1 %185 }
 0x21c   :  { %888 = vrcp.f32 %v186_v47 }
 0x222   :  { %v889_v51 = vpop.eup %888 }
 0x223   :  { %v189_v50 = vpop.xlane.xlu1 %188  ;;  %v192_v53 = vmul.f32 %v889_v51, %v885_v35 }
 0x224   :  { %890 = vrcp.f32 %v189_v50 }
 0x22a   :  { %v891_v52 = vpop.eup %890 }
 0x22b   :  { %v193_v54 = vmul.f32 %v891_v52, %v887_v38 }
 0x22d   :  { %v194_v55 = vpack.c.bf16 %v193_v54, %v192_v53 }
 0x22f   :  { %746 = vmatmul.msk.bf16.vlgmr.msrb.gmra.mxu0 %vm147_vm1, %v194_v55 }
 0x23f   :  { %786 = vmatmul.msk.bf16.vlgmr.msra.gmra.mxu0 %vm147_vm1, %v309_v58  ;;  %v865_v58 = vld [vmem:[%s1189_s8 + $0x8] sm:$0xff] }
 0x240   :  { %517 = vmatpush.bf16.msrb.mxu0 %v865_v58  ;;  %v874_v58 = vld [vmem:[%s1193_s12] sm:$0xff] }
 0x2ac   :  { %v208_v61 = vpop.f32.mrf.mxu0 }
 0x2b4   :  { %v210_v63 = vpop.f32.mrf.mxu0 }
 0x2b5   :  { %v213_v1 = vpack.c.bf16 %v210_v63, %v208_v61  ;;  %v864_v61 = vld [vmem:[%s1189_s8] sm:$0xff]  ;;  %v873_v63 = vld [vmem:[%s1190_s9 + $0x38] sm:$0xff]  ;;  %s939_s8 = smov 8  }
 0x2b6   :  { %518 = vmatpush.bf16.msrb.mxu0 %v864_v61  ;;  %592 = vmatpush.bf16.msra.mxu1 %v873_v63 }
 0x2b7   :  { %799 = vmatmul.msk.bf16.vlgmr.msrb.gmra.mxu3 %vm147_vm1, %v213_v1 }
 0x2bc   :  { %v326_v4 = vpop.f32.mrf.mxu0 }
 0x2bd   :  { %v331_v5 = vmul.f32 0.25, %v326_v4  ;;  %v872_v4 = vld [vmem:[%s1190_s9 + $0x30] sm:$0xff] }
 0x2be   :  { %593 = vmatpush.bf16.msra.mxu1 %v872_v4 }
 0x2bf   :  { %v333_v6 = vadd.f32 %v331_v5, %v1056_v18 }
 0x2c1   :  { %v335_v7 = vsel %vm147_vm1, %v333_v6, -inf }
 0x2c2   :  { %336 = vmax.xlane.f32.xlu2 %v335_v7 }
 0x2c4   :  { %v328_v8 = vpop.f32.mrf.mxu0 }
 0x2c5   :  { %v332_v9 = vmul.f32 0.25, %v328_v8  ;;  %v871_v8 = vld [vmem:[%s1190_s9 + $0x28] sm:$0xff] }
 0x2c6   :  { %594 = vmatpush.bf16.msra.mxu1 %v871_v8 }
 0x2c7   :  { %v334_v10 = vadd.f32 %v332_v9, %v1063_v23 }
 0x2c9   :  { %v338_v11 = vsel %vm147_vm1, %v334_v10, -inf }
 0x2ca   :  { %339 = vmax.xlane.f32.xlu2 %v338_v11  ;;  %v870_v11 = vld [vmem:[%s1190_s9 + $0x20] sm:$0xff] }
 0x2cb   :  { %595 = vmatpush.bf16.msra.mxu1 %v870_v11 }
 0x335   :  { %v337_v12 = vpop.xlane.xlu2 %336 }
 0x336   :  { %v341_v13 = vsub.f32 %v333_v6, %v337_v12 }
 0x338   :  { %v343_v14 = vmul.f32 1.442695, %v341_v13 }
 0x33a   :  { %892 = vpow2.f32 %v343_v14  ;;  %v421_v33 = vpop.f32.mrf.mxu3 }
 0x33d   :  { %v340_v15 = vpop.xlane.xlu2 %339 }
 0x33e   :  { %v342_v16 = vsub.f32 %v334_v10, %v340_v15 }
 0x340   :  { %v893_v17 = vpop.eup %892  ;;  %v345_v19 = vmul.f32 1.442695, %v342_v16  ;;  %v869_v16 = vld [vmem:[%s1190_s9 + $0x18] sm:$0xff] }
 0x341   :  { %v347_v18 = vsel %vm147_vm1, %v893_v17, 0.0  ;;  %596 = vmatpush.bf16.msra.mxu1 %v869_v16  ;;  %v883_v16 = vld [vmem:[%s1192_s11] ss:$0 sm:$0xff]  ;;  %s938_s11 = smov 128  }
 0x342   :  { %894 = vpow2.f32 %v345_v19  ;;  %348 = vadd.xlane.f32.xlu0 %v347_v18  ;;  %v423_v38 = vpop.f32.mrf.mxu3 }
 0x348   :  { %v895_v20 = vpop.eup %894 }
 0x349   :  { %v350_v21 = vsel %vm147_vm1, %v895_v20, 0.0 }
 0x34a   :  { %351 = vadd.xlane.f32.xlu1 %v350_v21  ;;  %v880_v21 = vld [vmem:[%s1187_s6] ss:$0 sm:$0xff] }
 0x3b5   :  { %v349_v22 = vpop.xlane.xlu0 %348 }
 0x3b6   :  { %896 = vrcp.f32 %v349_v22 }
 0x3bc   :  { %v897_v24 = vpop.eup %896 }
 0x3bd   :  { %v352_v23 = vpop.xlane.xlu1 %351  ;;  %v355_v26 = vmul.f32 %v897_v24, %v893_v17 }
 0x3be   :  { %898 = vrcp.f32 %v352_v23 }
 0x3bf   :  { %900 = vrcp.f32 %v936_v43 }
 0x3c4   :  { %v899_v25 = vpop.eup %898 }
 0x3c5   :  { %v356_v27 = vmul.f32 %v899_v25, %v895_v20  ;;  %v901_v44 = vpop.eup %900  ;;  %v881_v25 = vld [vmem:[%s1188_s7] ss:$0 sm:$0xff] }
 0x3c6   :  { %v435_v45 = vmul.f32 32.0, %v901_v44  ;;  %vm439_vm2 = vweird.f32 %v901_v44 }
 0x3c7   :  { %v357_v28 = vpack.c.bf16 %v356_v27, %v355_v26 }
 0x3c8   :  { %v436_v46 = vsub.f32 1.0, %v435_v45 }
 0x3c9   :  { %787 = vmatmul.msk.bf16.vlgmr.msrb.gmra.mxu1 %vm147_vm1, %v357_v28 }
 0x3ca   :  { %v437_v47 = vmul.f32 %v901_v44, %v436_v46 }
 0x3cc   :  { %v438_v48 = vadd.f32 %v901_v44, %v437_v47 }
 0x446   :  { %v371_v30 = vpop.f32.mrf.mxu1 }
 0x44e   :  { %v373_v31 = vpop.f32.mrf.mxu1 }
 0x44f   :  { %v376_v32 = vpack.c.bf16 %v373_v31, %v371_v30 }
 0x451   :  { %794 = vmatmul.msk.bf16.vlgmr.msra.gmra.mxu2 %vm147_vm1, %v376_v32  ;;  %v868_v32 = vld [vmem:[%s1190_s9 + $0x10] sm:$0xff] }
 0x452   :  { %597 = vmatpush.bf16.msra.mxu1 %v868_v32 }
 0x4d4   :  { %v398_v34 = vpop.f32.mrf.mxu2 }
 0x4d5   :  { %v422_v35 = vadd.f32 %v421_v33, %v398_v34  ;;  %v867_v33 = vld [vmem:[%s1190_s9 + $0x8] sm:$0xff]  ;;  %v866_v34 = vld [vmem:[%s1190_s9] sm:$0xff] }
 0x4d6   :  { %598 = vmatpush.bf16.msra.mxu1 %v867_v33 }
 0x4d7   :  { %v426_v36 = vadd.f32 %v422_v35, %v1019_v2  ;;  %v1112_v2 = vsel %vm439_vm2, %v901_v44, %v438_v48 }
 0x4d9   :  { %v428_v37 = vsel %vm67_vm0, %v426_v36, 0.0 }
 0x4da   :  { %429 = vadd.xlane.f32.xlu2 %v428_v37  ;;  %599 = vmatpush.bf16.msra.mxu1 %v866_v34 }
 0x4dc   :  { %v400_v39 = vpop.f32.mrf.mxu2 }
 0x4dd   :  { %v424_v40 = vadd.f32 %v423_v38, %v400_v39 }
 0x4df   :  { %v427_v41 = vadd.f32 %v424_v40, %v1024_v3 }
 0x4e1   :  { %v431_v42 = vsel %vm67_vm0, %v427_v41, 0.0 }
 0x4e2   :  { %432 = vadd.xlane.f32.xlu0 %v431_v42 }
 0x54d   :  { %v430_v49 = vpop.xlane.xlu2 %429 }
 0x54e   :  { %v441_v50 = vmul.f32 %v1112_v2, %v430_v49 }
 0x550   :  { %v443_v51 = vsub.f32 %v426_v36, %v441_v50 }
 0x552   :  { %v445_v52 = vmul.f32 %v443_v51, %v443_v51 }
 0x554   :  { %v447_v3 = vsel %vm67_vm0, %v445_v52, 0.0 }
 0x555   :  { %v433_v53 = vpop.xlane.xlu0 %432  ;;  %448 = vadd.xlane.f32.xlu1 %v447_v3 }
 0x556   :  { %v442_v54 = vmul.f32 %v1112_v2, %v433_v53 }
 0x558   :  { %v444_v55 = vsub.f32 %v427_v41, %v442_v54 }
 0x55a   :  { %v446_v56 = vmul.f32 %v444_v55, %v444_v55 }
 0x55c   :  { %v450_v57 = vsel %vm67_vm0, %v446_v56, 0.0 }
 0x55d   :  { %451 = vadd.xlane.f32.xlu2 %v450_v57 }
 0x5c8   :  { %v449_v59 = vpop.xlane.xlu1 %448 }
 0x5c9   :  { %v453_v60 = vmul.f32 %v449_v59, %v1112_v2 }
 0x5cb   :  { %v455_v62 = vadd.f32 1e-05, %v453_v60 }
 0x5cd   :  { %902 = vrsqrt.f32 %v455_v62  ;;  %vm463_vm4 = vweird.f32 %v455_v62 }
 0x5d0   :  { %v452_v0 = vpop.xlane.xlu2 %451 }
 0x5d1   :  { %v454_v1 = vmul.f32 %v452_v0, %v1112_v2 }
 0x5d3   :  { %v903_v5 = vpop.eup %902  ;;  %v456_v6 = vadd.f32 1e-05, %v454_v1 }
 0x5d4   :  { %v458_v7 = vmul.f32 %v903_v5, %v455_v62  ;;  %vm464_vm3 = vweird.f32 %v903_v5 }
 0x5d5   :  { %904 = vrsqrt.f32 %v456_v6  ;;  %vm465_vm5 = vmor %vm463_vm4, %vm464_vm3  ;;  %vm473_vm7 = vweird.f32 %v456_v6 }
 0x5d6   :  { %v459_v9 = vmul.f32 %v903_v5, %v458_v7 }
 0x5d8   :  { %v460_v10 = vmul.f32 0.5, %v459_v9 }
 0x5da   :  { %v461_v12 = vsub.f32 1.5, %v460_v10 }
 0x5db   :  { %v905_v13 = vpop.eup %904 }
 0x5dc   :  { %v462_v14 = vmul.f32 %v903_v5, %v461_v12  ;;  %v468_v15 = vmul.f32 %v905_v13, %v456_v6  ;;  %vm474_vm6 = vweird.f32 %v905_v13 }
 0x5dd   :  { %vm475_vm8 = vmor %vm473_vm7, %vm474_vm6 }
 0x5de   :  { %v469_v17 = vmul.f32 %v905_v13, %v468_v15  ;;  %v466_v19 = vsel %vm465_vm5, %v903_v5, %v462_v14 }
 0x5df   :  { %v477_v22 = vmul.f32 %v466_v19, %v443_v51 }
 0x5e0   :  { %v470_v18 = vmul.f32 0.5, %v469_v17 }
 0x5e1   :  { %v483_v26 = vmul.f32 %v880_v21, %v477_v22 }
 0x5e2   :  { %v471_v20 = vsub.f32 1.5, %v470_v18 }
 0x5e3   :  { %v489_v29 = vadd.f32 %v881_v25, %v483_v26 }
 0x5e4   :  { %v472_v23 = vmul.f32 %v905_v13, %v471_v20 }
 0x5e6   :  { %v476_v24 = vsel %vm475_vm8, %v905_v13, %v472_v23 }
 0x5e7   :  { %v478_v27 = vmul.f32 %v476_v24, %v444_v55  ;;  %v875_v55 = vld [vmem:[%s1193_s12 + $0x8] sm:$0xff] }
 0x5e8   :  { %690 = vmatpush.bf16.msrb.mxu2 %v875_v55 }
 0x5e9   :  { %v484_v28 = vmul.f32 %v880_v21, %v478_v27 }
 0x5eb   :  { %v490_v30 = vadd.f32 %v881_v25, %v484_v28 }
 0x5ec   :  { %691 = vmatpush.bf16.msrb.mxu2 %v874_v58 }
 0x5ed   :  { %v491_v31 = vpack.c.bf16 %v490_v30, %v489_v29 }
 0x5ef   :  { %808 = vmatmul.msk.bf16.vlgmr.msrb.gmra.mxu0 %vm67_vm0, %v491_v31 }
 0x66c   :  { %v520_v35 = vpop.f32.mrf.mxu0 }
 0x66d   :  { %v525_v37 = vmax.f32 %v520_v35, 0.0 }
 0x674   :  { %v522_v36 = vpop.f32.mrf.mxu0 }
 0x675   :  { %v526_v38 = vmax.f32 %v522_v36, 0.0 }
 0x677   :  { %v527_v39 = vpack.c.bf16 %v526_v38, %v525_v37 }
 0x679   :  { %600 = vmatmul.bf16.vlgmr.msra.gmra.mxu1 %v527_v39 }
 0x6f6   :  { %v601_v40 = vpop.f32.mrf.mxu1 }
 0x6f7   :  { %v606_v41 = vadd.f32 %v601_v40, %v489_v29 }
 0x6f9   :  { %v608_v42 = vsel %vm67_vm0, %v606_v41, 0.0 }
 0x6fa   :  { %609 = vadd.xlane.f32.xlu0 %v608_v42 }
 0x6fe   :  { %v603_v43 = vpop.f32.mrf.mxu1 }
 0x6ff   :  { %v607_v44 = vadd.f32 %v603_v43, %v490_v30 }
 0x701   :  { %v611_v45 = vsel %vm67_vm0, %v607_v44, 0.0 }
 0x702   :  { %612 = vadd.xlane.f32.xlu1 %v611_v45 }
 0x76d   :  { %v610_v46 = vpop.xlane.xlu0 %609 }
 0x76e   :  { %v614_v47 = vmul.f32 %v610_v46, %v1112_v2 }
 0x770   :  { %v616_v48 = vsub.f32 %v606_v41, %v614_v47 }
 0x772   :  { %v618_v49 = vmul.f32 %v616_v48, %v616_v48 }
 0x774   :  { %v620_v50 = vsel %vm67_vm0, %v618_v49, 0.0 }
 0x775   :  { %621 = vadd.xlane.f32.xlu2 %v620_v50  ;;  %v613_v51 = vpop.xlane.xlu1 %612 }
 0x776   :  { %v615_v52 = vmul.f32 %v613_v51, %v1112_v2 }
 0x778   :  { %v617_v3 = vsub.f32 %v607_v44, %v615_v52 }
 0x77a   :  { %v619_v53 = vmul.f32 %v617_v3, %v617_v3 }
 0x77c   :  { %v623_v54 = vsel %vm67_vm0, %v619_v53, 0.0 }
 0x77d   :  { %624 = vadd.xlane.f32.xlu0 %v623_v54 }
 0x7e8   :  { %v622_v56 = vpop.xlane.xlu2 %621 }
 0x7e9   :  { %v626_v57 = vmul.f32 %v622_v56, %v1112_v2 }
 0x7eb   :  { %v628_v59 = vadd.f32 1e-05, %v626_v57 }
 0x7ed   :  { %906 = vrsqrt.f32 %v628_v59  ;;  %vm636_vm10 = vweird.f32 %v628_v59 }
 0x7f0   :  { %v625_v60 = vpop.xlane.xlu0 %624 }
 0x7f1   :  { %v627_v61 = vmul.f32 %v625_v60, %v1112_v2  ;;  %v882_v2 = vld [vmem:[%s1191_s10] ss:$0 sm:$0xff]  ;;  %s937_s10 = smov [#allocation2]  }
 0x7f2   :  { %s704_s24 = sshll.u32 %s937_s10, 4  ;;  %s705_s24 = int_to_ptr.vmem [resolvable:$true] %s704_s24 }
 0x7f3   :  { %v907_v62 = vpop.eup %906  ;;  %v629_v63 = vadd.f32 1e-05, %v627_v61 }
 0x7f4   :  { %v631_v0 = vmul.f32 %v907_v62, %v628_v59  ;;  %vm637_vm9 = vweird.f32 %v907_v62 }
 0x7f5   :  { %908 = vrsqrt.f32 %v629_v63  ;;  %vm638_vm11 = vmor %vm636_vm10, %vm637_vm9  ;;  %vm646_vm13 = vweird.f32 %v629_v63 }
 0x7f6   :  { %v632_v1 = vmul.f32 %v907_v62, %v631_v0 }
 0x7f8   :  { %v633_v4 = vmul.f32 0.5, %v632_v1 }
 0x7fa   :  { %v634_v5 = vsub.f32 1.5, %v633_v4 }
 0x7fb   :  { %v909_v6 = vpop.eup %908 }
 0x7fc   :  { %v635_v7 = vmul.f32 %v907_v62, %v634_v5  ;;  %v641_v8 = vmul.f32 %v909_v6, %v629_v63  ;;  %vm647_vm12 = vweird.f32 %v909_v6 }
 0x7fd   :  { %vm648_vm14 = vmor %vm646_vm13, %vm647_vm12 }
 0x7fe   :  { %v642_v9 = vmul.f32 %v909_v6, %v641_v8  ;;  %v639_v10 = vsel %vm638_vm11, %v907_v62, %v635_v7 }
 0x7ff   :  { %v650_v13 = vmul.f32 %v639_v10, %v616_v48 }
 0x800   :  { %v643_v11 = vmul.f32 0.5, %v642_v9 }
 0x801   :  { %v656_v17 = vmul.f32 %v882_v2, %v650_v13 }
 0x802   :  { %v644_v12 = vsub.f32 1.5, %v643_v11 }
 0x803   :  { %v662_v20 = vadd.f32 %v883_v16, %v656_v17 }
 0x804   :  { %v645_v14 = vmul.f32 %v909_v6, %v644_v12 }
 0x806   :  { %v649_v15 = vsel %vm648_vm14, %v909_v6, %v645_v14 }
 0x807   :  { %v651_v19 = vmul.f32 %v649_v15, %v617_v3 }
 0x809   :  { %v657_v18 = vmul.f32 %v882_v2, %v651_v19 }
 0x80b   :  { %v663_v21 = vadd.f32 %v883_v16, %v657_v18 }
 0x80d   :  { %v664_v22 = vpack.c.bf16 %v663_v21, %v662_v20 }
 0x80f   :  { %849 = vmatmul.msk.bf16.vlgmr.msrb.gmra.mxu2 %vm67_vm0, %v664_v22 }
 0x892   :  { %v693_v23 = vpop.f32.mrf.mxu2 }
 0x893   :  { %698 = vst [vmem:[#allocation2] sm:$0xff] %v693_v23 }
 0x89a   :  { %v695_v24 = vpop.f32.mrf.mxu2 }
 0x89b   :  { %699 = vst [vmem:[#allocation2 + $0x8] sm:$0xff] %v695_v24 }
 0x89c   :  { %712 = dma.vmem_to_hbm [thread:$0]  %s705_s24, 256, %s707_s27, [#allocation3], %s938_s11, %s938_s11, %s939_s8  }
 0x89d   :  { %934 = dma.done.wait [#allocation3], 256  }
 0x89e   :  { %935 = vsyncadd [#allocation3], 4294967040 }
 0x89f   :  { %717 = vsyncpa [#allocation3], 1 }

</bundles_post_ra>
